<compile_context>
chip_gen: v5e
topology: v5e:2x2
jax: 0.10.0
libtpu: 0.0.40
codegen_flags: <defaults>
</compile_context>

<pallas_src>
import jax
import jax.numpy as jnp
from jax import lax
from jax.experimental import pallas as pl
from jax.experimental.pallas import tpu as pltpu

_NEG_INF = float("-inf")


# ----------------------------- shared cell math ------------------------------
def _fused_step(x, h, w_x, w_h, b, lane_mask):
    """One RNN-cell step on VMEM/vreg-resident values.

    Returns the fused (B, H+O) slab whose first H lanes are the new hidden
    state and whose last O lanes are log_softmax(logits). The log-softmax
    max/sum are taken over the full slab under `lane_mask` (lane >= H) so no
    lane-offset extract of the logits is needed inside the kernel.
    """
    fused = (jnp.dot(x, w_x, preferred_element_type=jnp.float32)
             + jnp.dot(h, w_h, preferred_element_type=jnp.float32)
             + b)                                            # (B, H+O)
    masked_logits = jnp.where(lane_mask, fused, _NEG_INF)
    m = jnp.max(masked_logits, axis=1, keepdims=True)        # (B, 1)
    exps = jnp.exp(jnp.where(lane_mask, fused - m, _NEG_INF))
    lse = jnp.log(jnp.sum(exps, axis=1, keepdims=True))      # (B, 1)
    # lanes < H keep the raw fused value (= new hidden); lanes >= H get log-softmax.
    return jnp.where(lane_mask, fused - m - lse, fused)


# ----------------------------- single-step kernel ----------------------------
def rnn_cell_kernel(x_ref, h_ref, w_ref, b_ref, slab_ref):
    B, I = x_ref.shape
    H = h_ref.shape[1]
    N = w_ref.shape[1]                                       # H + O
    w_x = w_ref[0:I, :]                                      # (I, N) aligned slice
    w_h = w_ref[I:, :]                                       # (H, N) aligned slice
    lane_mask = lax.broadcasted_iota(jnp.int32, (B, N), 1) >= H
    slab = _fused_step(x_ref[...], h_ref[...], w_x, w_h, b_ref[...], lane_mask)
    slab_ref[...] = slab.astype(slab_ref.dtype)              # single fused store


@jax.jit
def rnn_cell_forward(x, h, w_cat, b_cat):
    """Single Model.forward step. x: (B, I), h: (B, H) -> (log_softmax, new_h)."""
    B = x.shape[0]
    H = h.shape[1]
    N = w_cat.shape[1]
    vmem = pl.BlockSpec(memory_space=pltpu.VMEM)
    slab = pl.pallas_call(
        rnn_cell_kernel,
        out_shape=jax.ShapeDtypeStruct((B, N), jnp.float32),
        in_specs=[vmem, vmem, vmem, vmem],
        out_specs=vmem,
    )(x, h, w_cat, b_cat)
    # Wrapper-side slicing: layout plumbing, not compute.
    return slab[:, H:], slab[:, :H]


# -------------------- fused sequence kernel (time loop on-chip) --------------
def rnn_sequence_kernel(xseq_ref, h0_ref, w_ref, b_ref, slabseq_ref, hid_ref):
    T, B, I = xseq_ref.shape
    H = hid_ref.shape[1]
    N = w_ref.shape[1]                                       # H + O

    # Hoisted out of the time loop: weight views, bias, lane mask.
    w_x = w_ref[0:I, :]
    w_h = w_ref[I:, :]
    b = b_ref[...]
    lane_mask = lax.broadcasted_iota(jnp.int32, (B, N), 1) >= H

    def body(t, h):
        slab = _fused_step(xseq_ref[t], h, w_x, w_h, b, lane_mask)
        slabseq_ref[t] = slab.astype(slabseq_ref.dtype)
        return slab[:, 0:H]                                  # vreg-resident carry

    h_final = lax.fori_loop(0, T, body, h0_ref[...], unroll=True)
    hid_ref[...] = h_final.astype(hid_ref.dtype)             # stored exactly once


@jax.jit
def rnn_sequence_forward(x_seq, h0, w_cat, b_cat):
    """Apply the cell over a sequence. x_seq: (T, B, I). Returns (outs, h_T)."""
    T, B, I = x_seq.shape
    H = h0.shape[1]
    N = w_cat.shape[1]
    vmem = pl.BlockSpec(memory_space=pltpu.VMEM)
    slab_seq, hid = pl.pallas_call(
        rnn_sequence_kernel,
        out_shape=(
            jax.ShapeDtypeStruct((T, B, N), jnp.float32),    # fused per-step slabs
            jax.ShapeDtypeStruct((B, H), jnp.float32),       # final hidden
        ),
        in_specs=[vmem, vmem, vmem, vmem],
        out_specs=(vmem, vmem),
    )(x_seq, h0, w_cat, b_cat)
    out_seq = slab_seq[:, :, H:]                             # wrapper-side slice
    return out_seq, hid


# ----------------------------- parameter repacking ---------------------------
def fuse_params(wh, bh, wo, bo):
    """One-time (init-time) repack — NOT in the per-step path.

    W_cat = [Wh^T | Wo^T]  shape (I+H, H+O);  b_cat = [bh | bo]  shape (1, H+O).
    """
    w_cat = jnp.concatenate([wh.T, wo.T], axis=1).astype(jnp.float32)
    b_cat = jnp.concatenate([bh, bo]).reshape(1, -1).astype(jnp.float32)
    return w_cat, b_cat


# ----------------------------- pure-JAX reference ----------------------------
def reference_forward(x, h, wh, bh, wo, bo):
    combined = jnp.concatenate([x, h], axis=1)
    new_h = combined @ wh.T + bh
    logits = combined @ wo.T + bo
    return jax.nn.log_softmax(logits, axis=1), new_h


if __name__ == "__main__":
    B, T, INPUT, HIDDEN, OUTPUT = 2, 8, 16, 32, 8

    key = jax.random.PRNGKey(0)
    k1, k2, k3, k4, k5 = jax.random.split(key, 5)

    # PyTorch Linear-style uniform init (deterministic).
    bound = 1.0 / jnp.sqrt(float(INPUT + HIDDEN))
    wh = jax.random.uniform(k1, (HIDDEN, INPUT + HIDDEN), jnp.float32, -bound, bound)
    bh = jax.random.uniform(k2, (HIDDEN,), jnp.float32, -bound, bound)
    wo = jax.random.uniform(k3, (OUTPUT, INPUT + HIDDEN), jnp.float32, -bound, bound)
    bo = jax.random.uniform(k4, (OUTPUT,), jnp.float32, -bound, bound)

    x_seq = jax.random.normal(k5, (T, B, INPUT), jnp.float32)
    h0 = jnp.zeros((B, HIDDEN), jnp.float32)   # Model.initHidden (batched)

    w_cat, b_cat = fuse_params(wh, bh, wo, bo)  # hoisted out of the step path

    # ---- single cell: exact Model.forward semantics -------------------------
    out, hid = rnn_cell_forward(x_seq[0], h0, w_cat, b_cat)
    jax.block_until_ready((out, hid))
    ref_out, ref_hid = reference_forward(x_seq[0], h0, wh, bh, wo, bo)
    assert out.shape == (B, OUTPUT) and hid.shape == (B, HIDDEN)
    assert jnp.allclose(out, ref_out, atol=1e-5, rtol=1e-5)
    assert jnp.allclose(hid, ref_hid, atol=1e-5, rtol=1e-5)

    # ---- fused sequence kernel: whole time loop in one invocation -----------
    out_seq, hid_T = rnn_sequence_forward(x_seq, h0, w_cat, b_cat)
    jax.block_until_ready((out_seq, hid_T))

    def _ref_step(h, x):
        o, h_new = reference_forward(x, h, wh, bh, wo, bo)
        return h_new, o

    ref_hid_T, ref_out_seq = jax.lax.scan(_ref_step, h0, x_seq)
    assert out_seq.shape == (T, B, OUTPUT) and hid_T.shape == (B, HIDDEN)
    assert jnp.allclose(out_seq, ref_out_seq, atol=2e-4, rtol=2e-4)
    assert jnp.allclose(hid_T, ref_hid_T, atol=2e-4, rtol=2e-4)

    print("KERNEL_OK")
</pallas_src>

<mosaic_0001>
module attributes {stable_mosaic.version = 11 : i64} {
  func.func @rnn_cell_kernel(%arg0: memref<2x16xf32, #tpu.memory_space<vmem>>, %arg1: memref<2x32xf32, #tpu.memory_space<vmem>>, %arg2: memref<48x40xf32, #tpu.memory_space<vmem>>, %arg3: memref<1x40xf32, #tpu.memory_space<vmem>>, %arg4: memref<2x40xf32, #tpu.memory_space<vmem>>) attributes {dimension_semantics = [], scalar_prefetch = 0 : i64, scratch_operands = 0 : i64, tpu.core_type = #tpu.core_type<tc>} {
    %c0 = arith.constant 0 : index
    %c0_0 = arith.constant 0 : index
    %0 = vector.load %arg2[%c0, %c0_0] : memref<48x40xf32, #tpu.memory_space<vmem>>, vector<16x40xf32>
    %c16 = arith.constant 16 : index
    %c0_1 = arith.constant 0 : index
    %1 = vector.load %arg2[%c16, %c0_1] : memref<48x40xf32, #tpu.memory_space<vmem>>, vector<32x40xf32>
    %2 = tpu.iota {dimensions = array<i32: 1>} : vector<2x40xi32>
    %c32_i32 = arith.constant 32 : i32
    %3 = vector.broadcast %c32_i32 : i32 to vector<2x40xi32>
    %4 = arith.cmpi sge, %2, %3 : vector<2x40xi32>
    %c0_2 = arith.constant 0 : index
    %c0_3 = arith.constant 0 : index
    %5 = vector.load %arg0[%c0_2, %c0_3] : memref<2x16xf32, #tpu.memory_space<vmem>>, vector<2x16xf32>
    %c0_4 = arith.constant 0 : index
    %c0_5 = arith.constant 0 : index
    %6 = vector.load %arg1[%c0_4, %c0_5] : memref<2x32xf32, #tpu.memory_space<vmem>>, vector<2x32xf32>
    %c0_6 = arith.constant 0 : index
    %c0_7 = arith.constant 0 : index
    %7 = vector.load %arg3[%c0_6, %c0_7] : memref<1x40xf32, #tpu.memory_space<vmem>>, vector<1x40xf32>
    %cst = arith.constant dense<0.000000e+00> : vector<2x40xf32>
    %8 = tpu.matmul %5, %0, %cst {dimension_numbers = #tpu.dot_dimension_numbers<[1], [0], [0], [1], [0, 0, 1, 1], [], []>} : vector<2x16xf32>, vector<16x40xf32>, vector<2x40xf32> -> vector<2x40xf32>
    %cst_8 = arith.constant dense<0.000000e+00> : vector<2x40xf32>
    %9 = tpu.matmul %6, %1, %cst_8 {dimension_numbers = #tpu.dot_dimension_numbers<[1], [0], [0], [1], [0, 0, 1, 1], [], []>} : vector<2x32xf32>, vector<32x40xf32>, vector<2x40xf32> -> vector<2x40xf32>
    %10 = arith.addf %8, %9 : vector<2x40xf32>
    %11 = vector.broadcast %7 : vector<1x40xf32> to vector<2x40xf32>
    %12 = arith.addf %10, %11 : vector<2x40xf32>
    %cst_9 = arith.constant 0xFF800000 : f32
    %13 = vector.broadcast %cst_9 : f32 to vector<2x40xf32>
    %14 = arith.select %4, %12, %13 : vector<2x40xi1>, vector<2x40xf32>
    %cst_10 = arith.constant dense<0xFF800000> : vector<2xf32>
    %15 = vector.multi_reduction <maximumf>, %14, %cst_10 [1] : vector<2x40xf32> to vector<2xf32>
    %16 = vector.shape_cast %15 : vector<2xf32> to vector<2x1xf32>
    %17 = vector.broadcast %16 : vector<2x1xf32> to vector<2x40xf32>
    %18 = arith.subf %12, %17 : vector<2x40xf32>
    %cst_11 = arith.constant 0xFF800000 : f32
    %19 = vector.broadcast %cst_11 : f32 to vector<2x40xf32>
    %20 = arith.select %4, %18, %19 : vector<2x40xi1>, vector<2x40xf32>
    %21 = math.exp %20 : vector<2x40xf32>
    %cst_12 = arith.constant dense<0.000000e+00> : vector<2xf32>
    %22 = vector.multi_reduction <add>, %21, %cst_12 [1] : vector<2x40xf32> to vector<2xf32>
    %23 = vector.shape_cast %22 : vector<2xf32> to vector<2x1xf32>
    %24 = math.log %23 : vector<2x1xf32>
    %25 = vector.broadcast %16 : vector<2x1xf32> to vector<2x40xf32>
    %26 = arith.subf %12, %25 : vector<2x40xf32>
    %27 = vector.broadcast %24 : vector<2x1xf32> to vector<2x40xf32>
    %28 = arith.subf %26, %27 : vector<2x40xf32>
    %29 = arith.select %4, %28, %12 : vector<2x40xi1>, vector<2x40xf32>
    %c0_13 = arith.constant 0 : index
    %c0_14 = arith.constant 0 : index
    %30 = vector.load %arg4[%c0_13, %c0_14] : memref<2x40xf32, #tpu.memory_space<vmem>>, vector<2x40xf32>
    tpu.vector_store %arg4[%c0_13, %c0_14], %29 {strides = array<i32>} : memref<2x40xf32, #tpu.memory_space<vmem>>, vector<2x40xf32>,
    return
  }
}

</mosaic_0001>

<bundles_post_ra>
// kernel: rnn_cell_forward.1
= control target key start
LH: loop header
LB: loop body
LE: loop exit
PB: predicated region body
PF: predicated region fallthrough
CT: control target
= control target key end

     0   :  { %vm53_vm0 = vcmask 130048   ;;  %vm29_vm1 = vcmask 261120   ;;  %v23_v8 = vlaneseq  ;;  %vm82_vm3 = vcmask 320512   ;;  %s170_s2 = inlined_call_operand.vmem [shape: f32[48,40], index: 2, kind: input, shape index: {}]   ;;  %s171_s0 = inlined_call_operand.vmem [shape: f32[2,16], index: 0, kind: input, shape index: {}]   ;;  %s172_s1 = inlined_call_operand.vmem [shape: f32[2,32], index: 1, kind: input, shape index: {}]   ;;  %s173_s3 = inlined_call_operand.vmem [shape: f32[1,40], index: 3, kind: input, shape index: {}]   ;;  %s174_s4 = inlined_call_operand.vmem [shape: f32[2,40], index: 4, kind: output, shape index: {}]  }
   0x1   :  { %v22_v0 = vld [vmem:[%s170_s2 + $0x28] sm:$0xff]  ;;  %v21_v1 = vld [vmem:[%s170_s2 + $0x20] sm:$0xff]  ;;  %v20_v4 = vld [vmem:[%s170_s2 + $0x18] sm:$0xff] }
   0x2   :  { %45 = vmatpush.msra.mxu0 %v22_v0  ;;  %v18_v2 = vld [vmem:[%s170_s2 + $0x8] sm:$0xff]  ;;  %v17_v3 = vld [vmem:[%s170_s2] sm:$0xff]  ;;  %v19_v6 = vld [vmem:[%s170_s2 + $0x10] sm:$0xff]  ;;  %v24_v10 = vand.u32 127, %v23_v8 }
   0x3   :  { %71 = vmatpush.msra.mxu1 %v18_v2  ;;  %v26_v5 = vld [vmem:[%s171_s0] sm:$0x3] }
   0x4   :  { %46 = vmatpush.msra.mxu0 %v21_v1  ;;  %v27_v7 = vld [vmem:[%s172_s1] sm:$0x3]  ;;  %vm25_vm2 = vcmp.ge.s32.totalorder %v24_v10, 32 }
   0x5   :  { %72 = vmatpush.msra.mxu1 %v17_v3  ;;  %v104_v11 = vld [vmem:[%s173_s3] ss:$0 sm:$0xff] }
   0x6   :  { %47 = vmatpush.msra.mxu0 %v20_v4  ;;  %103 = vmatmul.msk.f32.vlgmr.msra.gmra.mxu1 %vm53_vm0, %v26_v5 }
   0x8   :  { %48 = vmatpush.msra.mxu0 %v19_v6 }
   0x9   :  { %102 = vmatmul.msk.f32.vlgmr.msra.gmra.mxu0 %vm29_vm1, %v27_v7 }
  0x83   :  { %v74_v9 = vpop.f32.mrf.mxu1 }
  0x86   :  { %v50_v12 = vpop.f32.mrf.mxu0 }
  0x87   :  { %v75_v13 = vadd.f32 %v74_v9, %v50_v12 }
  0x89   :  { %v80_v14 = vadd.f32 %v104_v11, %v75_v13 }
  0x8b   :  { %v81_v15 = vsel %vm25_vm2, %v80_v14, -inf }
  0x8c   :  { %v83_v16 = vsel %vm82_vm3, %v81_v15, -inf }
  0x8d   :  { %84 = vmax.xlane.f32.xlu0 %v83_v16 }
 0x100   :  { %v85_v17 = vpop.xlane.xlu0 %84 }
 0x101   :  { %v86_v18 = vsub.f32 %v80_v14, %v85_v17 }
 0x103   :  { %v87_v19 = vsel %vm25_vm2, %v86_v18, -inf }
 0x104   :  { %v88_v20 = vmul.f32 1.442695, %v87_v19 }
 0x106   :  { %105 = vpow2.f32 %v88_v20 }
 0x10c   :  { %v106_v21 = vpop.eup %105 }
 0x10d   :  { %v90_v22 = vsel %vm82_vm3, %v106_v21, 0.0 }
 0x10e   :  { %91 = vadd.xlane.f32.xlu0 %v90_v22 }
 0x181   :  { %v92_v23 = vpop.xlane.xlu0 %91 }
 0x182   :  { %107 = vlog2.f32 %v92_v23 }
 0x188   :  { %v108_v24 = vpop.eup %107 }
 0x189   :  { %v94_v25 = vmul.f32 0.6931472, %v108_v24 }
 0x18b   :  { %v95_v26 = vsub.f32 %v86_v18, %v94_v25 }
 0x18d   :  { %v96_v27 = vsel %vm25_vm2, %v95_v26, %v80_v14 }
 0x18e   :  { %97 = vst.msk [vmem:[%s174_s4] sm:$0x3] %vm82_vm3, %v96_v27 }

</bundles_post_ra>
